<compile_context>
chip_gen: v7x
topology: tpu7x:2x2x1
jax: 0.10.0
libtpu: 0.0.40
codegen_flags: <defaults>
</compile_context>

<pallas_src>
import jax
import jax.numpy as jnp
from jax.experimental import pallas as pl
from jax.experimental.pallas import tpu as pltpu

# ---- static problem sizes (small, consistent with the module) -------------
B, C, H, W = 2, 4, 16, 16          # image branch input (NCHW)
OC, KH, KW = 8, 3, 3               # conv: 4 -> 8 channels, 3x3, pad 1
PAD = 1
D_VEC, D_LIN = 32, 16              # vector branch: Linear(32 -> 16)

HW = H * W                         # 256  (flattened spatial, lane dim)
K_IM2COL = C * KH * KW             # 36   (contraction dim of the conv matmul)
K_AUG = K_IM2COL + 1               # 37   (+ constant-1 row for folded bias)
LANES = B * HW                     # 512  (both batch rows concatenated on lanes)
LHS_SIZE = OC * HW                 # 2048 (flattened conv output, CHW order)
RHS_SIZE = D_LIN                   # 16
TOT = LHS_SIZE + RHS_SIZE          # 2064


# ---------------------------------------------------------------------------
# Fused Pallas kernel: one conv matmul (bias folded) + ReLU + one Linear
# matmul (bias folded) + ReLU.  Single grid step, all stores dense/unmasked.
# ---------------------------------------------------------------------------
def _fused_flatten_cat_kernel(data_ref, wc_ref, xv_ref, wl_ref,
                              conv_ref, rhs_ref):
    # lhs branch: Conv2d(4->8, 3x3, pad 1) + bias + ReLU for BOTH batch rows
    # as a single aligned MXU matmul: (OC, 37) @ (37, B*HW) -> (8, 512).
    conv = jnp.dot(wc_ref[...], data_ref[...],
                   preferred_element_type=jnp.float32)
    conv_ref[...] = jnp.maximum(conv, 0.0)          # one dense (8, 512) store

    # rhs branch: Linear(32->16) + bias + ReLU for both rows:
    # (B, 33) @ (33, 16) -> (2, 16).
    r = jnp.dot(xv_ref[...], wl_ref[...],
                preferred_element_type=jnp.float32)
    rhs_ref[...] = jnp.maximum(r, 0.0)


def fused_flatten_cat(data_aug, w_aug, x_aug, wl_aug):
    conv_out, rhs_out = pl.pallas_call(
        _fused_flatten_cat_kernel,
        out_shape=(
            jax.ShapeDtypeStruct((OC, LANES), jnp.float32),   # conv (8, 512)
            jax.ShapeDtypeStruct((B, D_LIN), jnp.float32),    # rhs  (2, 16)
        ),
        grid=(1,),
        in_specs=[
            pl.BlockSpec((K_AUG, LANES), lambda i: (0, 0)),       # im2col+1s
            pl.BlockSpec((OC, K_AUG), lambda i: (0, 0)),          # conv W|b
            pl.BlockSpec((B, D_VEC + 1), lambda i: (0, 0)),       # x_vec|1s
            pl.BlockSpec((D_VEC + 1, D_LIN), lambda i: (0, 0)),   # lin W|b
        ],
        out_specs=(
            pl.BlockSpec((OC, LANES), lambda i: (0, 0)),
            pl.BlockSpec((B, D_LIN), lambda i: (0, 0)),
        ),
        compiler_params=pltpu.CompilerParams(
            dimension_semantics=("arbitrary",)),
    )(data_aug, w_aug, x_aug, wl_aug)
    return conv_out, rhs_out


# ---------------------------------------------------------------------------
# JAX wrapper: pad + im2col slab (~74 KB) + bias folding on the way in; the
# channel-major flatten + concat on the way out is one tiny contiguous fusion.
# ---------------------------------------------------------------------------
@jax.jit
def flatten_cat_forward(x_img, x_vec, params):
    w_conv, b_conv, w_lin, b_lin = params

    # ---- im2col: rows ordered (c, kh, kw) to match w_conv.reshape(OC, 36).
    xp = jnp.pad(x_img, ((0, 0), (0, 0), (PAD, PAD), (PAD, PAD)))  # (B,C,18,18)
    cols = jnp.stack(
        [xp[:, :, kh:kh + H, kw:kw + W] for kh in range(KH) for kw in range(KW)],
        axis=2)                                      # (B, C, 9, H, W)
    cols = cols.reshape(B, K_IM2COL, HW)             # (B, 36, 256)
    data = jnp.transpose(cols, (1, 0, 2)).reshape(K_IM2COL, LANES)  # (36, 512)
    data_aug = jnp.concatenate(
        [data, jnp.ones((1, LANES), jnp.float32)], axis=0)          # (37, 512)
    w_aug = jnp.concatenate(
        [w_conv.reshape(OC, K_IM2COL), b_conv[:, None]], axis=1)    # (8, 37)

    # ---- rhs branch operands with folded bias.
    x_aug = jnp.concatenate(
        [x_vec, jnp.ones((B, 1), jnp.float32)], axis=1)             # (2, 33)
    wl_aug = jnp.concatenate([w_lin, b_lin[None, :]], axis=0)       # (33, 16)

    conv_out, rhs_out = fused_flatten_cat(data_aug, w_aug, x_aug, wl_aug)

    # ---- PyTorch .view(-1, lhs_size) is (oc, h, w)-major per batch row.
    lhs = jnp.transpose(conv_out.reshape(OC, B, HW), (1, 0, 2)).reshape(B, LHS_SIZE)
    return jnp.concatenate([lhs, rhs_out], axis=1)                  # (B, 2064)


# ---------------------------------------------------------------------------
# Pure-JAX reference (sanity check only)
# ---------------------------------------------------------------------------
def reference(x_img, x_vec, params):
    w_conv, b_conv, w_lin, b_lin = params
    conv = jax.lax.conv_general_dilated(
        x_img, w_conv, window_strides=(1, 1), padding=((PAD, PAD), (PAD, PAD)),
        dimension_numbers=("NCHW", "OIHW", "NCHW"))
    lhs = jnp.maximum(conv + b_conv[None, :, None, None], 0.0).reshape(B, -1)
    rhs = jnp.maximum(x_vec @ w_lin + b_lin[None, :], 0.0).reshape(B, -1)
    return jnp.concatenate([lhs, rhs], axis=1)


if __name__ == "__main__":
    key = jax.random.PRNGKey(0)
    k_img, k_vec, k_wc, k_bc, k_wl, k_bl = jax.random.split(key, 6)

    # deterministic synthetic inputs
    x_img = jax.random.normal(k_img, (B, C, H, W), dtype=jnp.float32)
    x_vec = jax.random.normal(k_vec, (B, D_VEC), dtype=jnp.float32)

    # deterministic synthetic parameters (no checkpoint loading)
    w_conv = jax.random.normal(k_wc, (OC, C, KH, KW), dtype=jnp.float32) * 0.1
    b_conv = jax.random.normal(k_bc, (OC,), dtype=jnp.float32) * 0.1
    w_lin = jax.random.normal(k_wl, (D_VEC, D_LIN), dtype=jnp.float32) * 0.1
    b_lin = jax.random.normal(k_bl, (D_LIN,), dtype=jnp.float32) * 0.1
    params = (w_conv, b_conv, w_lin, b_lin)

    out = flatten_cat_forward(x_img, x_vec, params)
    out = jax.block_until_ready(out)

    assert out.shape == (B, TOT), out.shape
    ref = reference(x_img, x_vec, params)
    assert jnp.allclose(out, ref, atol=1e-4, rtol=1e-4), "mismatch vs reference"

    print("KERNEL_OK")
</pallas_src>

<mosaic_0001>
module attributes {stable_mosaic.version = 11 : i64} {
  func.func @_fused_flatten_cat_kernel(%arg0: i32, %arg1: memref<37x512xf32, #tpu.memory_space<vmem>>, %arg2: memref<8x37xf32, #tpu.memory_space<vmem>>, %arg3: memref<2x33xf32, #tpu.memory_space<vmem>>, %arg4: memref<33x16xf32, #tpu.memory_space<vmem>>, %arg5: memref<8x512xf32, #tpu.memory_space<vmem>>, %arg6: memref<2x16xf32, #tpu.memory_space<vmem>>) attributes {dimension_semantics = [#tpu.dimension_semantics<arbitrary>], iteration_bounds = array<i64: 1>, scalar_prefetch = 0 : i64, scratch_operands = 0 : i64, tpu.core_type = #tpu.core_type<tc>, window_params = [{pipeline_mode = #tpu.pipeline_mode<synchronous>, transform_indices = @transform_0, window_bounds = array<i64: 37, 512>}, {pipeline_mode = #tpu.pipeline_mode<synchronous>, transform_indices = @transform_1, window_bounds = array<i64: 8, 37>}, {pipeline_mode = #tpu.pipeline_mode<synchronous>, transform_indices = @transform_2, window_bounds = array<i64: 2, 33>}, {pipeline_mode = #tpu.pipeline_mode<synchronous>, transform_indices = @transform_3, window_bounds = array<i64: 33, 16>}, {pipeline_mode = #tpu.pipeline_mode<synchronous>, transform_indices = @transform_4, window_bounds = array<i64: 8, 512>}, {pipeline_mode = #tpu.pipeline_mode<synchronous>, transform_indices = @transform_5, window_bounds = array<i64: 2, 16>}]} {
    %c0 = arith.constant 0 : index
    %c0_0 = arith.constant 0 : index
    %0 = vector.load %arg2[%c0, %c0_0] : memref<8x37xf32, #tpu.memory_space<vmem>>, vector<8x37xf32>
    %c0_1 = arith.constant 0 : index
    %c0_2 = arith.constant 0 : index
    %1 = vector.load %arg1[%c0_1, %c0_2] : memref<37x512xf32, #tpu.memory_space<vmem>>, vector<37x512xf32>
    %cst = arith.constant dense<0.000000e+00> : vector<8x512xf32>
    %2 = tpu.matmul %0, %1, %cst {dimension_numbers = #tpu.dot_dimension_numbers<[1], [0], [0], [1], [0, 0, 1, 1], [], []>} : vector<8x37xf32>, vector<37x512xf32>, vector<8x512xf32> -> vector<8x512xf32>
    %cst_3 = arith.constant 0.000000e+00 : f32
    %3 = vector.broadcast %cst_3 : f32 to vector<8x512xf32>
    %4 = arith.maximumf %2, %3 : vector<8x512xf32>
    %c0_4 = arith.constant 0 : index
    %c0_5 = arith.constant 0 : index
    %5 = vector.load %arg5[%c0_4, %c0_5] : memref<8x512xf32, #tpu.memory_space<vmem>>, vector<8x512xf32>
    tpu.vector_store %arg5[%c0_4, %c0_5], %4 {strides = array<i32>} : memref<8x512xf32, #tpu.memory_space<vmem>>, vector<8x512xf32>,
    %c0_6 = arith.constant 0 : index
    %c0_7 = arith.constant 0 : index
    %6 = vector.load %arg3[%c0_6, %c0_7] : memref<2x33xf32, #tpu.memory_space<vmem>>, vector<2x33xf32>
    %c0_8 = arith.constant 0 : index
    %c0_9 = arith.constant 0 : index
    %7 = vector.load %arg4[%c0_8, %c0_9] : memref<33x16xf32, #tpu.memory_space<vmem>>, vector<33x16xf32>
    %cst_10 = arith.constant dense<0.000000e+00> : vector<2x16xf32>
    %8 = tpu.matmul %6, %7, %cst_10 {dimension_numbers = #tpu.dot_dimension_numbers<[1], [0], [0], [1], [0, 0, 1, 1], [], []>} : vector<2x33xf32>, vector<33x16xf32>, vector<2x16xf32> -> vector<2x16xf32>
    %cst_11 = arith.constant 0.000000e+00 : f32
    %9 = vector.broadcast %cst_11 : f32 to vector<2x16xf32>
    %10 = arith.maximumf %8, %9 : vector<2x16xf32>
    %c0_12 = arith.constant 0 : index
    %c0_13 = arith.constant 0 : index
    %11 = vector.load %arg6[%c0_12, %c0_13] : memref<2x16xf32, #tpu.memory_space<vmem>>, vector<2x16xf32>
    tpu.vector_store %arg6[%c0_12, %c0_13], %10 {strides = array<i32>} : memref<2x16xf32, #tpu.memory_space<vmem>>, vector<2x16xf32>,
    return
  }
  func.func @transform_0(%arg0: i32) -> (i32, i32) {
    %c0_i32 = arith.constant 0 : i32
    %c0_i32_0 = arith.constant 0 : i32
    %c0_i32_1 = arith.constant 0 : i32
    return %c0_i32, %c0_i32_0 : i32, i32
  }
  func.func @transform_1(%arg0: i32) -> (i32, i32) {
    %c0_i32 = arith.constant 0 : i32
    %c0_i32_0 = arith.constant 0 : i32
    %c0_i32_1 = arith.constant 0 : i32
    return %c0_i32, %c0_i32_0 : i32, i32
  }
  func.func @transform_2(%arg0: i32) -> (i32, i32) {
    %c0_i32 = arith.constant 0 : i32
    %c0_i32_0 = arith.constant 0 : i32
    %c0_i32_1 = arith.constant 0 : i32
    return %c0_i32, %c0_i32_0 : i32, i32
  }
  func.func @transform_3(%arg0: i32) -> (i32, i32) {
    %c0_i32 = arith.constant 0 : i32
    %c0_i32_0 = arith.constant 0 : i32
    %c0_i32_1 = arith.constant 0 : i32
    return %c0_i32, %c0_i32_0 : i32, i32
  }
  func.func @transform_4(%arg0: i32) -> (i32, i32) {
    %c0_i32 = arith.constant 0 : i32
    %c0_i32_0 = arith.constant 0 : i32
    %c0_i32_1 = arith.constant 0 : i32
    return %c0_i32, %c0_i32_0 : i32, i32
  }
  func.func @transform_5(%arg0: i32) -> (i32, i32) {
    %c0_i32 = arith.constant 0 : i32
    %c0_i32_0 = arith.constant 0 : i32
    %c0_i32_1 = arith.constant 0 : i32
    return %c0_i32, %c0_i32_0 : i32, i32
  }
}

</mosaic_0001>

<bundles_post_ra>
// kernel: flatten_cat_forward.1
= control target key start
LH: loop header
LB: loop body
LE: loop exit
PB: predicated region body
PF: predicated region fallthrough
CT: control target
= control target key end

     0   :  { %v354_v3 = vmov 0.0   ;;  %vm44_vm0 = vcmask 1044480   ;;  %vm40_vm1 = vcmask 302080   ;;  %v355_v35 = vmov 0.0|0.0   ;;  %s489_s0 = inlined_call_operand.vmem [shape: f32[37,512], index: 0, kind: input, shape index: {}]   ;;  %s490_s3 = inlined_call_operand.vmem [shape: f32[33,16], index: 3, kind: input, shape index: {}]   ;;  %s491_s1 = inlined_call_operand.vmem [shape: f32[8,37], index: 1, kind: input, shape index: {}]   ;;  %s492_s2 = inlined_call_operand.vmem [shape: f32[2,33], index: 2, kind: input, shape index: {}]   ;;  %s493_s4 = inlined_call_operand.vmem [shape: f32[8,512], index: 4, kind: output, shape index: {0}]   ;;  %s494_s5 = inlined_call_operand.vmem [shape: f32[2,16], index: 5, kind: output, shape index: {1}]  }
   0x1   :  { %v21_v0 = vld [vmem:[%s489_s0 + $0x8] sm:$0xff]  ;;  %v20_v2 = vld [vmem:[%s489_s0] sm:$0xff]  ;;  %121 = vmatprep.mubr.f32.mxu0 %v354_v3  ;;  %192 = vmatprep.mubr.f32.mxu1 %v354_v3  ;;  %v23_v12 = vld [vmem:[%s489_s0 + $0x18] sm:$0xff]  ;;  %vm356_vm2 = vmmov 0   ;;  %vm217_vm3 = vcmask 1040384   ;;  %vm213_vm4 = vcmask 269312  }
   0x2   :  { %v25_v1 = vld [vmem:[%s489_s0 + $0x28] sm:$0xff]  ;;  %v24_v5 = vld [vmem:[%s489_s0 + $0x20] sm:$0xff]  ;;  %v27_v13 = vld [vmem:[%s489_s0 + $0x38] sm:$0xff]  ;;  %vm292_vm5 = vcmask 123904  }
   0x3   :  { %v329_v4 = vpack.c.bf16 %v25_v1, %v21_v0  ;;  %v29_v6 = vld [vmem:[%s489_s0 + $0x48] sm:$0xff]  ;;  %v331_v8 = vpack.c.bf16 %v24_v5, %v20_v2  ;;  %v28_v10 = vld [vmem:[%s489_s0 + $0x40] sm:$0xff]  ;;  %v337_v15 = vpack.c.bf16 %v27_v13, %v23_v12  ;;  %v22_v16 = vld [vmem:[%s489_s0 + $0x10] sm:$0xff] }
   0x4   :  { %v33_v7 = vld [vmem:[%s489_s0 + $0x68] sm:$0xff]  ;;  %v32_v11 = vld [vmem:[%s489_s0 + $0x60] sm:$0xff]  ;;  %v26_v17 = vld [vmem:[%s489_s0 + $0x30] sm:$0xff] }
   0x5   :  { %v333_v9 = vpack.c.bf16 %v33_v7, %v29_v6  ;;  %330 = vmatprep.subr.bf16.mxu0 %v329_v4  ;;  %v335_v14 = vpack.c.bf16 %v32_v11, %v28_v10  ;;  %v37_v18 = vld [vmem:[%s489_s0 + $0x88] sm:$0x1f]  ;;  %v339_v19 = vpack.c.bf16 %v26_v17, %v22_v16  ;;  %v31_v20 = vld [vmem:[%s489_s0 + $0x58] sm:$0xff]  ;;  %338 = vmatprep.subr.bf16.mxu1 %v337_v15  ;;  %v30_v22 = vld [vmem:[%s489_s0 + $0x50] sm:$0xff] }
   0x6   :  { %332 = vmatpush1.bf16.msra.mxu0 %v331_v8  ;;  %v35_v21 = vld [vmem:[%s489_s0 + $0x78] sm:$0xff]  ;;  %v34_v23 = vld [vmem:[%s489_s0 + $0x70] sm:$0xff]  ;;  %v208_v24 = vld [vmem:[%s490_s3] sm:$0xff] }
   0x7   :  { %334 = vmatprep.subr.bf16.mxu0 %v333_v9  ;;  %340 = vmatpush1.bf16.msra.mxu1 %v339_v19  ;;  %v209_v25 = vld [vmem:[%s490_s3 + $0x8] sm:$0xff]  ;;  %v341_v26 = vpack.c.bf16 %v35_v21, %v31_v20  ;;  %v343_v27 = vpack.c.bf16 %v34_v23, %v30_v22  ;;  %v36_v28 = vld [vmem:[%s489_s0 + $0x80] sm:$0x1f]  ;;  %v39_v29 = vld [vmem:[%s489_s0 + $0x98] sm:$0x1f] }
   0x8   :  { %v19_v30 = vld [vmem:[%s491_s1] sm:$0xff]  ;;  %v346_v31 = vpack.c.bf16 %v209_v25, %v208_v24  ;;  %v210_v32 = vld [vmem:[%s490_s3 + $0x10] sm:$0xff]  ;;  %v211_v33 = vld [vmem:[%s490_s3 + $0x18] sm:$0xff] }
   0x9   :  { %342 = vmatprep.subr.bf16.mxu1 %v341_v26  ;;  %v38_v34 = vld [vmem:[%s489_s0 + $0x90] sm:$0x1f]  ;;  %v349_v36 = vpack.c.bf16 %v211_v33, %v210_v32  ;;  %v212_v37 = vld [vmem:[%s490_s3 + $0x20] sm:$0x1] }
   0xa   :  { %336 = vmatpush1.bf16.msra.mxu0 %v335_v14  ;;  %v207_v38 = vld [vmem:[%s492_s2] sm:$0x3] }
   0xb   :  { %302 = vmatprep.subr.msk.mxu0 %vm44_vm0, %v37_v18  ;;  %344 = vmatpush1.bf16.msra.mxu1 %v343_v27 }
   0xc   :  { %305 = vmatprep.subr.msk.mxu1 %vm44_vm0, %v39_v29 }
   0xe   :  { %303 = vmatpush1.msk.msra.mxu0 %vm44_vm0, %v36_v28 }
   0xf   :  { %304 = vmatmul.mubr.msk.f32.vlgmr.msra.gmra.mrb[0].mxu0 %vm40_vm1, %v19_v30  ;;  %345 = vmatprep.subr.bf16.mxu0 %v355_v35 }
  0x10   :  { %347 = vmatpush3.bf16.msra.mxu0 %v346_v31  ;;  %326 = vmatprep.mubr.msk.f32.mxu0 %vm356_vm2, %v354_v3 }
  0x11   :  { %348 = vmatprep.subr.bf16.mxu0 %v355_v35  ;;  %306 = vmatpush1.msk.msra.mxu1 %vm44_vm0, %v38_v34 }
  0x12   :  { %307 = vmatmul.mubr.msk.f32.vlgmr.msra.gmra.mrb[0].mxu1 %vm40_vm1, %v19_v30 }
  0x14   :  { %350 = vmatpush3.bf16.msra.mxu0 %v349_v36 }
  0x15   :  { %324 = vmatprep.subr.mxu0 %v354_v3 }
  0x18   :  { %325 = vmatpush3.msk.msra.mxu0 %vm217_vm3, %v212_v37 }
  0x19   :  { %327 = vmatmul.mubr.msk.f32.vlgmr.msra.gmra.mrb[2].mxu0 %vm213_vm4, %v207_v38 }
  0xe2   :  { %v123_v39 = vpop.f32.mrb[0].mxu0 }
  0xe3   :  { %v199_v40 = vmax.f32 %v123_v39, 0.0  ;;  %v125_v41 = vpop.f32.mrb[1].mxu0 }
  0xe4   :  { %v200_v42 = vmax.f32 %v125_v41, 0.0 }
  0xe5   :  { %203 = vst [vmem:[%s493_s4] sm:$0xff] %v199_v40  ;;  %v194_v43 = vpop.f32.mrb[0].mxu1 }
  0xe6   :  { %204 = vst [vmem:[%s493_s4 + $0x8] sm:$0xff] %v200_v42  ;;  %v201_v44 = vmax.f32 %v194_v43, 0.0  ;;  %v196_v45 = vpop.f32.mrb[1].mxu1 }
  0xe7   :  { %v202_v46 = vmax.f32 %v196_v45, 0.0 }
  0xe8   :  { %205 = vst [vmem:[%s493_s4 + $0x10] sm:$0xff] %v201_v44 }
  0xe9   :  { %206 = vst [vmem:[%s493_s4 + $0x18] sm:$0xff] %v202_v46 }
  0xec   :  { %v287_v47 = vpop.f32.mrb[2].mxu0 }
  0xed   :  { %v291_v48 = vmax.f32 %v287_v47, 0.0  ;;  %v328_v49 = vpop.f32.mrb[3].mxu0 }
  0xef   :  { %293 = vst.msk [vmem:[%s494_s5] sm:$0x3] %vm292_vm5, %v291_v48 }

</bundles_post_ra>
